<compile_context>
chip_gen: v5e
topology: v5e:2x2
jax: 0.10.0
libtpu: 0.0.40
codegen_flags: <defaults>
</compile_context>

<pallas_src>
import functools

import jax
import jax.numpy as jnp
from jax.experimental import pallas as pl
from jax.experimental.pallas import tpu as pltpu


def mlp_kernel(x_ref, w1_ref, b1_ref, w2_ref, b2_ref, w3_ref, b3_ref, o_ref):
    # fc1 + relu : bf16 x bf16 -> f32 accumulate, bias/ReLU in f32
    h1 = jnp.dot(x_ref[...], w1_ref[...], preferred_element_type=jnp.float32)
    h1 = jnp.maximum(h1 + b1_ref[...], 0.0)
    # fc2 + relu
    h2 = jnp.dot(h1.astype(jnp.bfloat16), w2_ref[...],
                 preferred_element_type=jnp.float32)
    h2 = jnp.maximum(h2 + b2_ref[...], 0.0)
    # fc3 (logits, no activation) -- lane-dense 128-wide f32 store
    h3 = jnp.dot(h2.astype(jnp.bfloat16), w3_ref[...],
                 preferred_element_type=jnp.float32)
    o_ref[...] = (h3 + b3_ref[...]).astype(o_ref.dtype)


def _round_up(n, m):
    return ((n + m - 1) // m) * m


@functools.partial(jax.jit, static_argnames=("tile_b",))
def mlp_classifier_forward(x, params, tile_b=128):
    """x: [B, input_dim] float32. params: dict of w1,b1,w2,b2,w3,b3 (f32)."""
    w1, b1 = params["w1"], params["b1"]
    w2, b2 = params["w2"], params["b2"]
    w3, b3 = params["w3"], params["b3"]

    batch, input_dim = x.shape
    h1d = w1.shape[1]          # 256
    h2d = w2.shape[1]          # 128
    num_classes = w3.shape[1]  # 10

    # ---- lane-pad the classifier head to a multiple of 128 columns ----------
    ncp = _round_up(num_classes, 128)
    w3p = jnp.zeros((h2d, ncp), jnp.float32).at[:, :num_classes].set(w3)
    b3p = jnp.zeros((1, ncp), jnp.float32).at[:, :num_classes].set(b3)

    # ---- pad batch to a multiple of tile_b (zero rows, sliced off later) ----
    bp = _round_up(batch, tile_b)
    xp = jnp.zeros((bp, input_dim), x.dtype).at[:batch].set(x)

    # ---- bf16 weights/activations, f32 biases ----
    xb = xp.astype(jnp.bfloat16)
    w1b = w1.astype(jnp.bfloat16)
    w2b = w2.astype(jnp.bfloat16)
    w3b = w3p.astype(jnp.bfloat16)
    b1f = b1.astype(jnp.float32)
    b2f = b2.astype(jnp.float32)
    b3f = b3p.astype(jnp.float32)

    grid = (bp // tile_b,)

    out = pl.pallas_call(
        mlp_kernel,
        out_shape=jax.ShapeDtypeStruct((bp, ncp), jnp.float32),
        grid_spec=pltpu.PrefetchScalarGridSpec(
            num_scalar_prefetch=0,
            grid=grid,
            in_specs=[
                # x: tiled along batch, pipelined/double-buffered per grid step
                pl.BlockSpec((tile_b, input_dim), lambda i: (i, 0)),
                # weights & biases: constant index_map -> VMEM-resident, DMA once
                pl.BlockSpec((input_dim, h1d), lambda i: (0, 0)),
                pl.BlockSpec((1, h1d), lambda i: (0, 0)),
                pl.BlockSpec((h1d, h2d), lambda i: (0, 0)),
                pl.BlockSpec((1, h2d), lambda i: (0, 0)),
                pl.BlockSpec((h2d, ncp), lambda i: (0, 0)),
                pl.BlockSpec((1, ncp), lambda i: (0, 0)),
            ],
            out_specs=pl.BlockSpec((tile_b, ncp), lambda i: (i, 0)),
        ),
        compiler_params=pltpu.CompilerParams(
            # batch axis is independent -> shard across v7x's 2 TCs; no-op on
            # single-TC v5e/v6e.
            dimension_semantics=("parallel",),
        ),
    )(xb, w1b, b1f, w2b, b2f, w3b, b3f)

    # strip batch padding and lane padding
    return out[:batch, :num_classes]


def init_params(key, input_dim, num_classes):
    """Deterministic synthetic params (PyTorch nn.Linear init, stored transposed)."""
    ks = jax.random.split(key, 6)

    def uinit(k, shape, fan_in):
        bound = 1.0 / jnp.sqrt(fan_in)
        return jax.random.uniform(k, shape, jnp.float32, -bound, bound)

    h1, h2 = 256, 128
    return {
        "w1": uinit(ks[0], (input_dim, h1), input_dim),
        "b1": uinit(ks[1], (1, h1), input_dim),
        "w2": uinit(ks[2], (h1, h2), h1),
        "b2": uinit(ks[3], (1, h2), h1),
        "w3": uinit(ks[4], (h2, num_classes), h2),
        "b3": uinit(ks[5], (1, num_classes), h2),
    }


if __name__ == "__main__":
    key = jax.random.PRNGKey(0)
    k_x, k_p = jax.random.split(key)

    batch, input_dim, num_classes = 8, 32, 10
    x = jax.random.normal(k_x, (batch, input_dim), jnp.float32)
    params = init_params(k_p, input_dim, num_classes)

    out = mlp_classifier_forward(x, params)
    out = jax.block_until_ready(out)
    assert out.shape == (batch, num_classes)

    # Pure-JAX reference with the SAME mixed precision (bf16 operands, f32 acc).
    w1b = params["w1"].astype(jnp.bfloat16)
    w2b = params["w2"].astype(jnp.bfloat16)
    w3b = params["w3"].astype(jnp.bfloat16)
    r = jnp.dot(x.astype(jnp.bfloat16), w1b, preferred_element_type=jnp.float32)
    r = jnp.maximum(r + params["b1"], 0.0)
    r = jnp.dot(r.astype(jnp.bfloat16), w2b, preferred_element_type=jnp.float32)
    r = jnp.maximum(r + params["b2"], 0.0)
    ref = jnp.dot(r.astype(jnp.bfloat16), w3b,
                  preferred_element_type=jnp.float32) + params["b3"]
    assert jnp.allclose(out, ref, atol=1e-3, rtol=1e-3)

    # Sanity check against the full-f32 forward (loose: bf16 weight rounding).
    f = jnp.maximum(x @ params["w1"] + params["b1"], 0.0)
    f = jnp.maximum(f @ params["w2"] + params["b2"], 0.0)
    f = f @ params["w3"] + params["b3"]
    assert jnp.allclose(out, f, atol=1e-1, rtol=1e-1)

    print("KERNEL_OK")
</pallas_src>

<mosaic_0001>
module attributes {stable_mosaic.version = 11 : i64} {
  func.func @mlp_kernel(%arg0: i32, %arg1: memref<128x32xbf16, #tpu.memory_space<vmem>>, %arg2: memref<32x256xbf16, #tpu.memory_space<vmem>>, %arg3: memref<1x256xf32, #tpu.memory_space<vmem>>, %arg4: memref<256x128xbf16, #tpu.memory_space<vmem>>, %arg5: memref<1x128xf32, #tpu.memory_space<vmem>>, %arg6: memref<128x128xbf16, #tpu.memory_space<vmem>>, %arg7: memref<1x128xf32, #tpu.memory_space<vmem>>, %arg8: memref<128x128xf32, #tpu.memory_space<vmem>>) attributes {dimension_semantics = [#tpu.dimension_semantics<parallel>], iteration_bounds = array<i64: 1>, scalar_prefetch = 0 : i64, scratch_operands = 0 : i64, tpu.core_type = #tpu.core_type<tc>, window_params = [{transform_indices = @transform_0, window_bounds = array<i64: 128, 32>}, {pipeline_mode = #tpu.pipeline_mode<synchronous>, transform_indices = @transform_1, window_bounds = array<i64: 32, 256>}, {pipeline_mode = #tpu.pipeline_mode<synchronous>, transform_indices = @transform_2, window_bounds = array<i64: 1, 256>}, {pipeline_mode = #tpu.pipeline_mode<synchronous>, transform_indices = @transform_3, window_bounds = array<i64: 256, 128>}, {pipeline_mode = #tpu.pipeline_mode<synchronous>, transform_indices = @transform_4, window_bounds = array<i64: 1, 128>}, {pipeline_mode = #tpu.pipeline_mode<synchronous>, transform_indices = @transform_5, window_bounds = array<i64: 128, 128>}, {pipeline_mode = #tpu.pipeline_mode<synchronous>, transform_indices = @transform_6, window_bounds = array<i64: 1, 128>}, {transform_indices = @transform_7, window_bounds = array<i64: 128, 128>}]} {
    %c0 = arith.constant 0 : index
    %c0_0 = arith.constant 0 : index
    %0 = vector.load %arg1[%c0, %c0_0] : memref<128x32xbf16, #tpu.memory_space<vmem>>, vector<128x32xbf16>
    %c0_1 = arith.constant 0 : index
    %c0_2 = arith.constant 0 : index
    %1 = vector.load %arg2[%c0_1, %c0_2] : memref<32x256xbf16, #tpu.memory_space<vmem>>, vector<32x256xbf16>
    %cst = arith.constant dense<0.000000e+00> : vector<128x256xf32>
    %2 = tpu.matmul %0, %1, %cst {dimension_numbers = #tpu.dot_dimension_numbers<[1], [0], [0], [1], [0, 0, 1, 1], [], []>} : vector<128x32xbf16>, vector<32x256xbf16>, vector<128x256xf32> -> vector<128x256xf32>
    %c0_3 = arith.constant 0 : index
    %c0_4 = arith.constant 0 : index
    %3 = vector.load %arg3[%c0_3, %c0_4] : memref<1x256xf32, #tpu.memory_space<vmem>>, vector<1x256xf32>
    %4 = vector.broadcast %3 : vector<1x256xf32> to vector<128x256xf32>
    %5 = arith.addf %2, %4 : vector<128x256xf32>
    %cst_5 = arith.constant 0.000000e+00 : f32
    %6 = vector.broadcast %cst_5 : f32 to vector<128x256xf32>
    %7 = arith.maximumf %5, %6 : vector<128x256xf32>
    %8 = arith.truncf %7 : vector<128x256xf32> to vector<128x256xbf16>
    %c0_6 = arith.constant 0 : index
    %c0_7 = arith.constant 0 : index
    %9 = vector.load %arg4[%c0_6, %c0_7] : memref<256x128xbf16, #tpu.memory_space<vmem>>, vector<256x128xbf16>
    %cst_8 = arith.constant dense<0.000000e+00> : vector<128x128xf32>
    %10 = tpu.matmul %8, %9, %cst_8 {dimension_numbers = #tpu.dot_dimension_numbers<[1], [0], [0], [1], [0, 0, 1, 1], [], []>} : vector<128x256xbf16>, vector<256x128xbf16>, vector<128x128xf32> -> vector<128x128xf32>
    %c0_9 = arith.constant 0 : index
    %c0_10 = arith.constant 0 : index
    %11 = vector.load %arg5[%c0_9, %c0_10] : memref<1x128xf32, #tpu.memory_space<vmem>>, vector<1x128xf32>
    %12 = vector.broadcast %11 : vector<1x128xf32> to vector<128x128xf32>
    %13 = arith.addf %10, %12 : vector<128x128xf32>
    %cst_11 = arith.constant 0.000000e+00 : f32
    %14 = vector.broadcast %cst_11 : f32 to vector<128x128xf32>
    %15 = arith.maximumf %13, %14 : vector<128x128xf32>
    %16 = arith.truncf %15 : vector<128x128xf32> to vector<128x128xbf16>
    %c0_12 = arith.constant 0 : index
    %c0_13 = arith.constant 0 : index
    %17 = vector.load %arg6[%c0_12, %c0_13] : memref<128x128xbf16, #tpu.memory_space<vmem>>, vector<128x128xbf16>
    %cst_14 = arith.constant dense<0.000000e+00> : vector<128x128xf32>
    %18 = tpu.matmul %16, %17, %cst_14 {dimension_numbers = #tpu.dot_dimension_numbers<[1], [0], [0], [1], [0, 0, 1, 1], [], []>} : vector<128x128xbf16>, vector<128x128xbf16>, vector<128x128xf32> -> vector<128x128xf32>
    %c0_15 = arith.constant 0 : index
    %c0_16 = arith.constant 0 : index
    %19 = vector.load %arg7[%c0_15, %c0_16] : memref<1x128xf32, #tpu.memory_space<vmem>>, vector<1x128xf32>
    %20 = vector.broadcast %19 : vector<1x128xf32> to vector<128x128xf32>
    %21 = arith.addf %18, %20 : vector<128x128xf32>
    %c0_17 = arith.constant 0 : index
    %c0_18 = arith.constant 0 : index
    %22 = vector.load %arg8[%c0_17, %c0_18] : memref<128x128xf32, #tpu.memory_space<vmem>>, vector<128x128xf32>
    tpu.vector_store %arg8[%c0_17, %c0_18], %21 {strides = array<i32>} : memref<128x128xf32, #tpu.memory_space<vmem>>, vector<128x128xf32>,
    return
  }
  func.func @transform_0(%arg0: i32) -> (i32, i32) {
    %c0_i32 = arith.constant 0 : i32
    %c0_i32_0 = arith.constant 0 : i32
    return %arg0, %c0_i32 : i32, i32
  }
  func.func @transform_1(%arg0: i32) -> (i32, i32) {
    %c0_i32 = arith.constant 0 : i32
    %c0_i32_0 = arith.constant 0 : i32
    %c0_i32_1 = arith.constant 0 : i32
    return %c0_i32, %c0_i32_0 : i32, i32
  }
  func.func @transform_2(%arg0: i32) -> (i32, i32) {
    %c0_i32 = arith.constant 0 : i32
    %c0_i32_0 = arith.constant 0 : i32
    %c0_i32_1 = arith.constant 0 : i32
    return %c0_i32, %c0_i32_0 : i32, i32
  }
  func.func @transform_3(%arg0: i32) -> (i32, i32) {
    %c0_i32 = arith.constant 0 : i32
    %c0_i32_0 = arith.constant 0 : i32
    %c0_i32_1 = arith.constant 0 : i32
    return %c0_i32, %c0_i32_0 : i32, i32
  }
  func.func @transform_4(%arg0: i32) -> (i32, i32) {
    %c0_i32 = arith.constant 0 : i32
    %c0_i32_0 = arith.constant 0 : i32
    %c0_i32_1 = arith.constant 0 : i32
    return %c0_i32, %c0_i32_0 : i32, i32
  }
  func.func @transform_5(%arg0: i32) -> (i32, i32) {
    %c0_i32 = arith.constant 0 : i32
    %c0_i32_0 = arith.constant 0 : i32
    %c0_i32_1 = arith.constant 0 : i32
    return %c0_i32, %c0_i32_0 : i32, i32
  }
  func.func @transform_6(%arg0: i32) -> (i32, i32) {
    %c0_i32 = arith.constant 0 : i32
    %c0_i32_0 = arith.constant 0 : i32
    %c0_i32_1 = arith.constant 0 : i32
    return %c0_i32, %c0_i32_0 : i32, i32
  }
  func.func @transform_7(%arg0: i32) -> (i32, i32) {
    %c0_i32 = arith.constant 0 : i32
    %c0_i32_0 = arith.constant 0 : i32
    return %arg0, %c0_i32 : i32, i32
  }
}

</mosaic_0001>

<bundles_post_ra>
// kernel: mlp_classifier_forward.1
= control target key start
LH: loop header
LB: loop body
LE: loop exit
PB: predicated region body
PF: predicated region fallthrough
CT: control target
= control target key end

     0   :  { %vm113_vm0 = vcmask 261120   ;;  %s1166_s1 = inlined_call_operand.vmem [shape: bf16[32,256], index: 1, kind: input, shape index: {}]   ;;  %s1167_s0 = inlined_call_operand.vmem [shape: bf16[128,32], index: 0, kind: input, shape index: {}]   ;;  %s1168_s3 = inlined_call_operand.vmem [shape: bf16[256,128], index: 3, kind: input, shape index: {}]   ;;  %s1169_s2 = inlined_call_operand.vmem [shape: f32[1,256], index: 2, kind: input, shape index: {}]   ;;  %s1170_s4 = inlined_call_operand.vmem [shape: f32[1,128], index: 4, kind: input, shape index: {}]   ;;  %s1171_s5 = inlined_call_operand.vmem [shape: bf16[128,128], index: 5, kind: input, shape index: {}]   ;;  %s1172_s6 = inlined_call_operand.vmem [shape: f32[1,128], index: 6, kind: input, shape index: {}]   ;;  %s1173_s7 = inlined_call_operand.vmem [shape: f32[128,128], index: 7, kind: output, shape index: {}]  }
   0x1   :  { %v717_v0 = vld [vmem:[%s1166_s1 + $0x10] sm:$0xf]  ;;  %v846_v1 = vld [vmem:[%s1166_s1 + $0x14] sm:$0xf0]  ;;  %v709_v2 = vld [vmem:[%s1166_s1] sm:$0xf] }
   0x2   :  { %v718_v3 = vor.u32 %v846_v1, %v717_v0  ;;  %v844_v4 = vld [vmem:[%s1166_s1 + $0x4] sm:$0xf0]  ;;  %v845_v5 = vld [vmem:[%s1166_s1 + $0x14] sm:$0xf]  ;;  %v719_v6 = vld [vmem:[%s1166_s1 + $0x18] sm:$0xf0] }
   0x3   :  { %v710_v7 = vor.u32 %v844_v4, %v709_v2  ;;  %v722_v8 = vor.u32 %v845_v5, %v719_v6  ;;  %v843_v9 = vld [vmem:[%s1166_s1 + $0x4] sm:$0xf]  ;;  %v711_v10 = vld [vmem:[%s1166_s1 + $0x8] sm:$0xf0]  ;;  %v837_v12 = vld [vmem:[%s1167_s0 + $0x10] sm:$0xff] }
   0x4   :  { %144 = vmatpush.bf16.msra.mxu0 %v718_v3  ;;  %871 = vmatpush.bf16.msra.mxu1 %v718_v3  ;;  %v835_v11 = vld [vmem:[%s1167_s0] sm:$0xff]  ;;  %v714_v13 = vor.u32 %v843_v9, %v711_v10  ;;  %v836_v14 = vld [vmem:[%s1167_s0 + $0x8] sm:$0xff]  ;;  %v838_v15 = vld [vmem:[%s1167_s0 + $0x18] sm:$0xff] }
   0x5   :  { %872 = vmatpush.bf16.msra.mxu2 %v718_v3  ;;  %873 = vmatpush.bf16.msra.mxu3 %v718_v3  ;;  %v839_v16 = vld [vmem:[%s1167_s0 + $0x20] sm:$0xff]  ;;  %v840_v17 = vld [vmem:[%s1167_s0 + $0x28] sm:$0xff]  ;;  %v854_v18 = vld [vmem:[%s1168_s3 + $0x38] sm:$0xff] }
   0x6   :  { %v853_v19 = vld [vmem:[%s1168_s3 + $0x30] sm:$0xff]  ;;  %v852_v21 = vld [vmem:[%s1168_s3 + $0x28] sm:$0xff]  ;;  %v851_v22 = vld [vmem:[%s1168_s3 + $0x20] sm:$0xff] }
   0x7   :  { %v841_v20 = vld [vmem:[%s1167_s0 + $0x30] sm:$0xff]  ;;  %v850_v23 = vld [vmem:[%s1168_s3 + $0x18] sm:$0xff]  ;;  %v848_v25 = vld [vmem:[%s1168_s3 + $0x8] sm:$0xff] }
   0x8   :  { %145 = vmatpush.bf16.msra.mxu0 %v710_v7  ;;  %874 = vmatpush.bf16.msra.mxu1 %v710_v7  ;;  %v849_v24 = vld [vmem:[%s1168_s3 + $0x10] sm:$0xff]  ;;  %v842_v26 = vld [vmem:[%s1167_s0 + $0x38] sm:$0xff]  ;;  %v847_v27 = vld [vmem:[%s1168_s3] sm:$0xff] }
   0x9   :  { %875 = vmatpush.bf16.msra.mxu2 %v710_v7  ;;  %876 = vmatpush.bf16.msra.mxu3 %v710_v7  ;;  %v862_v28 = vld [vmem:[%s1168_s3 + $0x78] sm:$0xff]  ;;  %v47_v29 = vld [vmem:[%s1169_s2] sm:$0x3]  ;;  %v861_v32 = vld [vmem:[%s1168_s3 + $0x70] sm:$0xff] }
   0xa   :  { %v1013_v33 = vperm.slane %v47_v29, 0  ;;  %v860_v35 = vld [vmem:[%s1168_s3 + $0x68] sm:$0xff]  ;;  %v859_v40 = vld [vmem:[%s1168_s3 + $0x60] sm:$0xff]  ;;  %v858_v43 = vld [vmem:[%s1168_s3 + $0x58] sm:$0xff]  ;;  %v1042_v0 = vperm.slane %v47_v29, 1 }
   0xb   :  { %723 = vmatmul.msk.bf16.vlgmr.msra.gmra.mxu0 %vm113_vm0, %v835_v11  ;;  %725 = vmatmul.msk.bf16.vlgmr.msra.gmra.mxu1 %vm113_vm0, %v837_v12  ;;  %v857_v46 = vld [vmem:[%s1168_s3 + $0x50] sm:$0xff]  ;;  %v856_v48 = vld [vmem:[%s1168_s3 + $0x48] sm:$0xff]  ;;  %v855_v53 = vld [vmem:[%s1168_s3 + $0x40] sm:$0xff] }
   0xc   :  { %193 = vmatpush.bf16.msrb.mxu1 %v722_v8  ;;  %728 = vmatmul.msk.bf16.vlgmr.msra.gmra.mxu2 %vm113_vm0, %v840_v17 }
   0xd   :  { %416 = vmatpush.bf16.msrb.mxu2 %v854_v18  ;;  %730 = vmatmul.msk.bf16.vlgmr.msra.gmra.mxu3 %vm113_vm0, %v842_v26 }
   0xe   :  { %465 = vmatpush.bf16.msrb.mxu3 %v862_v28 }
  0x10   :  { %194 = vmatpush.bf16.msrb.mxu1 %v714_v13 }
  0x11   :  { %417 = vmatpush.bf16.msrb.mxu2 %v853_v19 }
  0x12   :  { %466 = vmatpush.bf16.msrb.mxu3 %v861_v32 }
  0x15   :  { %418 = vmatpush.bf16.msrb.mxu2 %v852_v21 }
  0x16   :  { %467 = vmatpush.bf16.msrb.mxu3 %v860_v35 }
  0x19   :  { %419 = vmatpush.bf16.msrb.mxu2 %v851_v22 }
  0x1a   :  { %468 = vmatpush.bf16.msrb.mxu3 %v859_v40 }
  0x1b   :  { %724 = vmatmul.msk.bf16.gmra.mxu0 %vm113_vm0, %v836_v14  ;;  %726 = vmatmul.msk.bf16.gmra.mxu1 %vm113_vm0, %v838_v15 }
  0x1c   :  { %729 = vmatmul.msk.bf16.gmra.mxu2 %vm113_vm0, %v841_v20 }
  0x1d   :  { %420 = vmatpush.bf16.msrb.mxu2 %v850_v23 }
  0x1e   :  { %469 = vmatpush.bf16.msrb.mxu3 %v858_v43 }
  0x21   :  { %421 = vmatpush.bf16.msrb.mxu2 %v849_v24 }
  0x22   :  { %470 = vmatpush.bf16.msrb.mxu3 %v857_v46 }
  0x25   :  { %422 = vmatpush.bf16.msrb.mxu2 %v848_v25 }
  0x26   :  { %471 = vmatpush.bf16.msrb.mxu3 %v856_v48 }
  0x29   :  { %423 = vmatpush.bf16.msrb.mxu2 %v847_v27 }
  0x2a   :  { %472 = vmatpush.bf16.msrb.mxu3 %v855_v53 }
  0x2b   :  { %727 = vmatmul.msk.bf16.gmra.mxu1 %vm113_vm0, %v839_v16 }
  0x3b   :  { %731 = vmatmul.msk.bf16.vlgmr.msrb.gmra.mxu1 %vm113_vm0, %v835_v11 }
  0x4b   :  { %732 = vmatmul.msk.bf16.gmra.mxu1 %vm113_vm0, %v836_v14 }
  0x5b   :  { %733 = vmatmul.msk.bf16.gmra.mxu1 %vm113_vm0, %v837_v12 }
  0x6b   :  { %734 = vmatmul.msk.bf16.gmra.mxu1 %vm113_vm0, %v838_v15 }
  0x7b   :  { %735 = vmatmul.msk.bf16.gmra.mxu1 %vm113_vm0, %v839_v16 }
  0x88   :  { %v147_v30 = vpop.f32.mrf.mxu0  ;;  %v157_v31 = vpop.f32.mrf.mxu1 }
  0x89   :  { %v148_v34 = vadd.f32 %v147_v30, %v1013_v33  ;;  %v158_v58 = vadd.f32 %v157_v31, %v1013_v33 }
  0x8b   :  { %736 = vmatmul.msk.bf16.gmra.mxu1 %vm113_vm0, %v840_v17  ;;  %v236_v38 = vmax.f32 %v148_v34, 0.0  ;;  %v244_v61 = vmax.f32 %v158_v58, 0.0 }
  0x8f   :  { %v172_v22 = vpop.f32.mrf.mxu2 }
  0x90   :  { %v149_v36 = vpop.f32.mrf.mxu0  ;;  %v159_v37 = vpop.f32.mrf.mxu1 }
  0x91   :  { %v150_v39 = vadd.f32 %v149_v36, %v1013_v33  ;;  %v160_v57 = vadd.f32 %v159_v37, %v1013_v33  ;;  %v182_v53 = vpop.f32.mrf.mxu3 }
  0x93   :  { %v238_v41 = vmax.f32 %v150_v39, 0.0  ;;  %v246_v60 = vmax.f32 %v160_v57, 0.0 }
  0x95   :  { %v268_v42 = vpack.c.bf16 %v238_v41, %v236_v38  ;;  %v272_v62 = vpack.c.bf16 %v246_v60, %v244_v61 }
  0x97   :  { %424 = vmatmul.bf16.vlgmr.msrb.gmra.mxu2 %v268_v42  ;;  %v174_v27 = vpop.f32.mrf.mxu2 }
  0x98   :  { %v152_v44 = vpop.f32.mrf.mxu0  ;;  %v162_v45 = vpop.f32.mrf.mxu1  ;;  %v175_v28 = vadd.f32 %v174_v27, %v1013_v33 }
  0x99   :  { %v153_v47 = vadd.f32 %v152_v44, %v1013_v33  ;;  %v163_v2 = vadd.f32 %v162_v45, %v1013_v33 }
  0x9a   :  { %v258_v31 = vmax.f32 %v175_v28, 0.0 }
  0x9b   :  { %737 = vmatmul.msk.bf16.gmra.mxu1 %vm113_vm0, %v841_v20  ;;  %v240_v51 = vmax.f32 %v153_v47, 0.0  ;;  %v248_v7 = vmax.f32 %v163_v2, 0.0 }
  0x9f   :  { %v177_v38 = vpop.f32.mrf.mxu2 }
  0xa0   :  { %v154_v49 = vpop.f32.mrf.mxu0  ;;  %v164_v50 = vpop.f32.mrf.mxu1  ;;  %v178_v41 = vadd.f32 %v177_v38, %v1013_v33  ;;  %v1097_v38 = vld [vmem:[%s1170_s4] ss:$0 sm:$0xff] }
  0xa1   :  { %v155_v52 = vadd.f32 %v154_v49, %v1013_v33  ;;  %v165_v1 = vadd.f32 %v164_v50, %v1013_v33 }
  0xa2   :  { %v260_v45 = vmax.f32 %v178_v41, 0.0 }
  0xa3   :  { %v242_v54 = vmax.f32 %v155_v52, 0.0  ;;  %v250_v5 = vmax.f32 %v165_v1, 0.0 }
  0xa5   :  { %v270_v55 = vpack.c.bf16 %v242_v54, %v240_v51  ;;  %v274_v11 = vpack.c.bf16 %v250_v5, %v248_v7 }
  0xa7   :  { %429 = vmatmul.bf16.gmra.mxu2 %v270_v55  ;;  %v179_v42 = vpop.f32.mrf.mxu2  ;;  %v183_v55 = vadd.f32 %v182_v53, %v1013_v33 }
  0xa8   :  { %v167_v56 = vpop.f32.mrf.mxu1  ;;  %v180_v43 = vadd.f32 %v179_v42, %v1013_v33 }
  0xa9   :  { %v168_v14 = vadd.f32 %v167_v56, %v1013_v33  ;;  %v184_v56 = vpop.f32.mrf.mxu3  ;;  %v264_v58 = vmax.f32 %v183_v55, 0.0 }
  0xaa   :  { %v262_v46 = vmax.f32 %v180_v43, 0.0 }
  0xab   :  { %738 = vmatmul.msk.bf16.gmra.mxu1 %vm113_vm0, %v842_v26  ;;  %v252_v19 = vmax.f32 %v168_v14, 0.0  ;;  %v173_v26 = vadd.f32 %v172_v22, %v1013_v33 }
  0xac   :  { %v280_v51 = vpack.c.bf16 %v262_v46, %v260_v45 }
  0xad   :  { %v256_v30 = vmax.f32 %v173_v26, 0.0 }
  0xaf   :  { %v278_v37 = vpack.c.bf16 %v258_v31, %v256_v30 }
  0xb0   :  { %v169_v59 = vpop.f32.mrf.mxu1 }
  0xb1   :  { %v170_v13 = vadd.f32 %v169_v59, %v1013_v33  ;;  %v185_v59 = vadd.f32 %v184_v56, %v1013_v33  ;;  %v870_v33 = vld [vmem:[%s1171_s5 + $0x38] sm:$0xff] }
  0xb2   :  { %606 = vmatpush.bf16.msrb.mxu0 %v870_v33 }
  0xb3   :  { %v254_v17 = vmax.f32 %v170_v13, 0.0  ;;  %v868_v13 = vld [vmem:[%s1171_s5 + $0x28] sm:$0xff] }
  0xb5   :  { %v276_v23 = vpack.c.bf16 %v254_v17, %v252_v19  ;;  %v867_v19 = vld [vmem:[%s1171_s5 + $0x20] sm:$0xff] }
  0xb7   :  { %434 = vmatmul.bf16.gmra.mxu2 %v272_v62  ;;  %v266_v62 = vmax.f32 %v185_v59, 0.0 }
  0xb8   :  { %v196_v63 = vpop.f32.mrf.mxu1 }
  0xb9   :  { %v197_v3 = vadd.f32 %v196_v63, %v1042_v0  ;;  %v282_v2 = vpack.c.bf16 %v266_v62, %v264_v58 }
  0xbb   :  { %v237_v8 = vmax.f32 %v197_v3, 0.0 }
  0xc0   :  { %v198_v4 = vpop.f32.mrf.mxu1 }
  0xc1   :  { %v199_v6 = vadd.f32 %v198_v4, %v1042_v0 }
  0xc3   :  { %v239_v9 = vmax.f32 %v199_v6, 0.0 }
  0xc5   :  { %v269_v10 = vpack.c.bf16 %v239_v9, %v237_v8 }
  0xc7   :  { %439 = vmatmul.bf16.gmra.mxu2 %v274_v11  ;;  %473 = vmatmul.bf16.vlgmr.msrb.gmra.mxu3 %v269_v10 }
  0xc8   :  { %v201_v12 = vpop.f32.mrf.mxu1 }
  0xc9   :  { %v202_v15 = vadd.f32 %v201_v12, %v1042_v0  ;;  %v869_v12 = vld [vmem:[%s1171_s5 + $0x30] sm:$0xff] }
  0xca   :  { %607 = vmatpush.bf16.msrb.mxu0 %v869_v12 }
  0xcb   :  { %v241_v20 = vmax.f32 %v202_v15, 0.0 }
  0xce   :  { %608 = vmatpush.bf16.msrb.mxu0 %v868_v13 }
  0xd0   :  { %v203_v16 = vpop.f32.mrf.mxu1 }
  0xd1   :  { %v204_v18 = vadd.f32 %v203_v16, %v1042_v0 }
  0xd2   :  { %609 = vmatpush.bf16.msrb.mxu0 %v867_v19 }
  0xd3   :  { %v243_v21 = vmax.f32 %v204_v18, 0.0 }
  0xd5   :  { %v271_v24 = vpack.c.bf16 %v243_v21, %v241_v20  ;;  %v866_v21 = vld [vmem:[%s1171_s5 + $0x18] sm:$0xff] }
  0xd6   :  { %610 = vmatpush.bf16.msrb.mxu0 %v866_v21 }
  0xd7   :  { %444 = vmatmul.bf16.gmra.mxu2 %v276_v23  ;;  %478 = vmatmul.bf16.gmra.mxu3 %v271_v24  ;;  %v865_v24 = vld [vmem:[%s1171_s5 + $0x10] sm:$0xff] }
  0xd8   :  { %v206_v25 = vpop.f32.mrf.mxu1 }
  0xd9   :  { %v207_v29 = vadd.f32 %v206_v25, %v1042_v0  ;;  %v864_v25 = vld [vmem:[%s1171_s5 + $0x8] sm:$0xff] }
  0xda   :  { %611 = vmatpush.bf16.msrb.mxu0 %v865_v24 }
  0xdb   :  { %v245_v35 = vmax.f32 %v207_v29, 0.0 }
  0xde   :  { %612 = vmatpush.bf16.msrb.mxu0 %v864_v25 }
  0xe0   :  { %v208_v32 = vpop.f32.mrf.mxu1 }
  0xe1   :  { %v209_v34 = vadd.f32 %v208_v32, %v1042_v0  ;;  %v863_v32 = vld [vmem:[%s1171_s5] sm:$0xff] }
  0xe2   :  { %613 = vmatpush.bf16.msrb.mxu0 %v863_v32 }
  0xe3   :  { %v247_v36 = vmax.f32 %v209_v34, 0.0 }
  0xe5   :  { %v273_v39 = vpack.c.bf16 %v247_v36, %v245_v35 }
  0xe7   :  { %483 = vmatmul.bf16.gmra.mxu3 %v273_v39  ;;  %449 = vmatmul.bf16.gmra.mxu2 %v278_v37 }
  0xe8   :  { %v211_v40 = vpop.f32.mrf.mxu1 }
  0xe9   :  { %v212_v44 = vadd.f32 %v211_v40, %v1042_v0 }
  0xeb   :  { %v249_v49 = vmax.f32 %v212_v44, 0.0 }
  0xf0   :  { %v213_v47 = vpop.f32.mrf.mxu1 }
  0xf1   :  { %v214_v48 = vadd.f32 %v213_v47, %v1042_v0 }
  0xf3   :  { %v251_v50 = vmax.f32 %v214_v48, 0.0 }
  0xf5   :  { %v275_v52 = vpack.c.bf16 %v251_v50, %v249_v49 }
  0xf7   :  { %488 = vmatmul.bf16.gmra.mxu3 %v275_v52  ;;  %454 = vmatmul.bf16.gmra.mxu2 %v280_v51 }
  0xf8   :  { %v216_v54 = vpop.f32.mrf.mxu1 }
  0xf9   :  { %v217_v57 = vadd.f32 %v216_v54, %v1042_v0 }
  0xfb   :  { %v253_v63 = vmax.f32 %v217_v57, 0.0 }
 0x100   :  { %v218_v60 = vpop.f32.mrf.mxu1 }
 0x101   :  { %v219_v61 = vadd.f32 %v218_v60, %v1042_v0 }
 0x103   :  { %v255_v1 = vmax.f32 %v219_v61, 0.0 }
 0x105   :  { %v277_v3 = vpack.c.bf16 %v255_v1, %v253_v63 }
 0x107   :  { %493 = vmatmul.bf16.gmra.mxu3 %v277_v3  ;;  %459 = vmatmul.bf16.gmra.mxu2 %v282_v2 }
 0x108   :  { %v221_v4 = vpop.f32.mrf.mxu1 }
 0x109   :  { %v222_v5 = vadd.f32 %v221_v4, %v1042_v0 }
 0x10b   :  { %v257_v8 = vmax.f32 %v222_v5, 0.0 }
 0x110   :  { %v223_v6 = vpop.f32.mrf.mxu1 }
 0x111   :  { %v224_v7 = vadd.f32 %v223_v6, %v1042_v0 }
 0x113   :  { %v259_v9 = vmax.f32 %v224_v7, 0.0 }
 0x115   :  { %v279_v10 = vpack.c.bf16 %v259_v9, %v257_v8 }
 0x117   :  { %498 = vmatmul.bf16.gmra.mxu3 %v279_v10 }
 0x118   :  { %v226_v11 = vpop.f32.mrf.mxu1 }
 0x119   :  { %v227_v14 = vadd.f32 %v226_v11, %v1042_v0 }
 0x11a   :  { %v425_v23 = vpop.f32.mrf.mxu2 }
 0x11b   :  { %v261_v17 = vmax.f32 %v227_v14, 0.0 }
 0x120   :  { %v228_v15 = vpop.f32.mrf.mxu1 }
 0x121   :  { %v229_v16 = vadd.f32 %v228_v15, %v1042_v0 }
 0x122   :  { %v427_v31 = vpop.f32.mrf.mxu2 }
 0x123   :  { %v263_v18 = vmax.f32 %v229_v16, 0.0  ;;  %v428_v39 = vadd.f32 %v1097_v38, %v427_v31 }
 0x125   :  { %v281_v20 = vpack.c.bf16 %v263_v18, %v261_v17 }
 0x127   :  { %503 = vmatmul.bf16.gmra.mxu3 %v281_v20 }
 0x128   :  { %v231_v22 = vpop.f32.mrf.mxu1 }
 0x129   :  { %v232_v26 = vadd.f32 %v231_v22, %v1042_v0 }
 0x12a   :  { %v430_v35 = vpop.f32.mrf.mxu2 }
 0x12b   :  { %v265_v29 = vmax.f32 %v232_v26, 0.0  ;;  %v431_v49 = vadd.f32 %v1097_v38, %v430_v35 }
 0x130   :  { %v233_v27 = vpop.f32.mrf.mxu1 }
 0x131   :  { %v234_v28 = vadd.f32 %v233_v27, %v1042_v0  ;;  %v426_v0 = vadd.f32 %v1097_v38, %v425_v23 }
 0x132   :  { %v432_v36 = vpop.f32.mrf.mxu2 }
 0x133   :  { %v267_v30 = vmax.f32 %v234_v28, 0.0  ;;  %v433_v50 = vadd.f32 %v1097_v38, %v432_v36 }
 0x135   :  { %v283_v34 = vpack.c.bf16 %v267_v30, %v265_v29 }
 0x137   :  { %508 = vmatmul.bf16.gmra.mxu3 %v283_v34 }
 0x13a   :  { %v435_v41 = vpop.f32.mrf.mxu2 }
 0x13b   :  { %v436_v59 = vadd.f32 %v1097_v38, %v435_v41 }
 0x142   :  { %v437_v48 = vpop.f32.mrf.mxu2 }
 0x143   :  { %v438_v61 = vadd.f32 %v1097_v38, %v437_v48 }
 0x14a   :  { %v474_v37 = vpop.f32.mrf.mxu3  ;;  %v440_v56 = vpop.f32.mrf.mxu2 }
 0x14b   :  { %v475_v40 = vadd.f32 %v474_v37, %v426_v0  ;;  %v441_v7 = vadd.f32 %v1097_v38, %v440_v56 }
 0x14d   :  { %v514_v44 = vmax.f32 %v475_v40, 0.0 }
 0x152   :  { %v476_v42 = vpop.f32.mrf.mxu3  ;;  %v442_v60 = vpop.f32.mrf.mxu2 }
 0x153   :  { %v477_v43 = vadd.f32 %v476_v42, %v428_v39  ;;  %v443_v8 = vadd.f32 %v1097_v38, %v442_v60 }
 0x155   :  { %v515_v45 = vmax.f32 %v477_v43, 0.0 }
 0x157   :  { %v530_v46 = vpack.c.bf16 %v515_v45, %v514_v44 }
 0x159   :  { %614 = vmatmul.bf16.vlgmr.msrb.gmra.mxu0 %v530_v46 }
 0x15a   :  { %v479_v47 = vpop.f32.mrf.mxu3  ;;  %v445_v5 = vpop.f32.mrf.mxu2 }
 0x15b   :  { %v480_v51 = vadd.f32 %v479_v47, %v431_v49  ;;  %v446_v17 = vadd.f32 %v1097_v38, %v445_v5 }
 0x15d   :  { %v516_v54 = vmax.f32 %v480_v51, 0.0 }
 0x162   :  { %v481_v52 = vpop.f32.mrf.mxu3  ;;  %v447_v11 = vpop.f32.mrf.mxu2 }
 0x163   :  { %v482_v53 = vadd.f32 %v481_v52, %v433_v50  ;;  %v448_v18 = vadd.f32 %v1097_v38, %v447_v11 }
 0x165   :  { %v517_v55 = vmax.f32 %v482_v53, 0.0 }
 0x167   :  { %v531_v57 = vpack.c.bf16 %v517_v55, %v516_v54 }
 0x169   :  { %619 = vmatmul.bf16.gmra.mxu0 %v531_v57 }
 0x16a   :  { %v484_v58 = vpop.f32.mrf.mxu3  ;;  %v450_v16 = vpop.f32.mrf.mxu2 }
 0x16b   :  { %v485_v62 = vadd.f32 %v484_v58, %v436_v59  ;;  %v451_v27 = vadd.f32 %v1097_v38, %v450_v16  ;;  %v878_v58 = vld [vmem:[%s1172_s6] ss:$0 sm:$0xff] }
 0x16d   :  { %v518_v2 = vmax.f32 %v485_v62, 0.0 }
 0x172   :  { %v486_v63 = vpop.f32.mrf.mxu3  ;;  %v452_v24 = vpop.f32.mrf.mxu2 }
 0x173   :  { %v487_v1 = vadd.f32 %v486_v63, %v438_v61  ;;  %v453_v29 = vadd.f32 %v1097_v38, %v452_v24 }
 0x175   :  { %v519_v3 = vmax.f32 %v487_v1, 0.0 }
 0x177   :  { %v532_v4 = vpack.c.bf16 %v519_v3, %v518_v2 }
 0x179   :  { %624 = vmatmul.bf16.gmra.mxu0 %v532_v4 }
 0x17a   :  { %v489_v6 = vpop.f32.mrf.mxu3  ;;  %v455_v28 = vpop.f32.mrf.mxu2 }
 0x17b   :  { %v490_v9 = vadd.f32 %v489_v6, %v441_v7  ;;  %v456_v39 = vadd.f32 %v1097_v38, %v455_v28 }
 0x17d   :  { %v520_v12 = vmax.f32 %v490_v9, 0.0 }
 0x182   :  { %v491_v10 = vpop.f32.mrf.mxu3  ;;  %v457_v37 = vpop.f32.mrf.mxu2 }
 0x183   :  { %v492_v33 = vadd.f32 %v491_v10, %v443_v8  ;;  %v458_v40 = vadd.f32 %v1097_v38, %v457_v37 }
 0x185   :  { %v521_v13 = vmax.f32 %v492_v33, 0.0 }
 0x187   :  { %v533_v14 = vpack.c.bf16 %v521_v13, %v520_v12 }
 0x189   :  { %629 = vmatmul.bf16.gmra.mxu0 %v533_v14 }
 0x18a   :  { %v494_v15 = vpop.f32.mrf.mxu3  ;;  %v460_v44 = vpop.f32.mrf.mxu2 }
 0x18b   :  { %v495_v19 = vadd.f32 %v494_v15, %v446_v17  ;;  %v461_v50 = vadd.f32 %v1097_v38, %v460_v44 }
 0x18d   :  { %v522_v22 = vmax.f32 %v495_v19, 0.0 }
 0x192   :  { %v496_v20 = vpop.f32.mrf.mxu3  ;;  %v462_v49 = vpop.f32.mrf.mxu2 }
 0x193   :  { %v497_v21 = vadd.f32 %v496_v20, %v448_v18  ;;  %v463_v51 = vadd.f32 %v1097_v38, %v462_v49 }
 0x195   :  { %v523_v23 = vmax.f32 %v497_v21, 0.0 }
 0x197   :  { %v534_v25 = vpack.c.bf16 %v523_v23, %v522_v22 }
 0x199   :  { %634 = vmatmul.bf16.gmra.mxu0 %v534_v25 }
 0x19a   :  { %v499_v26 = vpop.f32.mrf.mxu3 }
 0x19b   :  { %v500_v30 = vadd.f32 %v499_v26, %v451_v27 }
 0x19d   :  { %v524_v34 = vmax.f32 %v500_v30, 0.0 }
 0x1a2   :  { %v501_v31 = vpop.f32.mrf.mxu3 }
 0x1a3   :  { %v502_v32 = vadd.f32 %v501_v31, %v453_v29 }
 0x1a5   :  { %v525_v35 = vmax.f32 %v502_v32, 0.0 }
 0x1a7   :  { %v535_v36 = vpack.c.bf16 %v525_v35, %v524_v34 }
 0x1a9   :  { %639 = vmatmul.bf16.gmra.mxu0 %v535_v36 }
 0x1aa   :  { %v504_v0 = vpop.f32.mrf.mxu3 }
 0x1ab   :  { %v505_v41 = vadd.f32 %v504_v0, %v456_v39 }
 0x1ad   :  { %v526_v45 = vmax.f32 %v505_v41, 0.0 }
 0x1b2   :  { %v506_v42 = vpop.f32.mrf.mxu3 }
 0x1b3   :  { %v507_v43 = vadd.f32 %v506_v42, %v458_v40 }
 0x1b5   :  { %v527_v46 = vmax.f32 %v507_v43, 0.0 }
 0x1b7   :  { %v536_v47 = vpack.c.bf16 %v527_v46, %v526_v45 }
 0x1b9   :  { %644 = vmatmul.bf16.gmra.mxu0 %v536_v47 }
 0x1ba   :  { %v509_v48 = vpop.f32.mrf.mxu3 }
 0x1bb   :  { %v510_v52 = vadd.f32 %v509_v48, %v461_v50 }
 0x1bd   :  { %v528_v55 = vmax.f32 %v510_v52, 0.0 }
 0x1c2   :  { %v511_v53 = vpop.f32.mrf.mxu3 }
 0x1c3   :  { %v512_v54 = vadd.f32 %v511_v53, %v463_v51 }
 0x1c5   :  { %v529_v56 = vmax.f32 %v512_v54, 0.0 }
 0x1c7   :  { %v537_v57 = vpack.c.bf16 %v529_v56, %v528_v55 }
 0x1c9   :  { %649 = vmatmul.bf16.gmra.mxu0 %v537_v57 }
 0x1d6   :  { %v615_v59 = vpop.f32.mrf.mxu0 }
 0x1d7   :  { %v616_v60 = vadd.f32 %v878_v58, %v615_v59 }
 0x1d9   :  { %655 = vst [vmem:[%s1173_s7] sm:$0xff] %v616_v60 }
 0x1de   :  { %v617_v61 = vpop.f32.mrf.mxu0 }
 0x1df   :  { %v618_v62 = vadd.f32 %v878_v58, %v617_v61 }
 0x1e1   :  { %656 = vst [vmem:[%s1173_s7 + $0x8] sm:$0xff] %v618_v62 }
 0x1e6   :  { %v620_v38 = vpop.f32.mrf.mxu0 }
 0x1e7   :  { %v621_v63 = vadd.f32 %v878_v58, %v620_v38 }
 0x1e9   :  { %657 = vst [vmem:[%s1173_s7 + $0x10] sm:$0xff] %v621_v63 }
 0x1ee   :  { %v622_v1 = vpop.f32.mrf.mxu0 }
 0x1ef   :  { %v623_v2 = vadd.f32 %v878_v58, %v622_v1 }
 0x1f1   :  { %658 = vst [vmem:[%s1173_s7 + $0x18] sm:$0xff] %v623_v2 }
 0x1f6   :  { %v625_v3 = vpop.f32.mrf.mxu0 }
 0x1f7   :  { %v626_v4 = vadd.f32 %v878_v58, %v625_v3 }
 0x1f9   :  { %659 = vst [vmem:[%s1173_s7 + $0x20] sm:$0xff] %v626_v4 }
 0x1fe   :  { %v627_v5 = vpop.f32.mrf.mxu0 }
 0x1ff   :  { %v628_v6 = vadd.f32 %v878_v58, %v627_v5 }
 0x201   :  { %660 = vst [vmem:[%s1173_s7 + $0x28] sm:$0xff] %v628_v6 }
 0x206   :  { %v630_v7 = vpop.f32.mrf.mxu0 }
 0x207   :  { %v631_v8 = vadd.f32 %v878_v58, %v630_v7 }
 0x209   :  { %661 = vst [vmem:[%s1173_s7 + $0x30] sm:$0xff] %v631_v8 }
 0x20e   :  { %v632_v9 = vpop.f32.mrf.mxu0 }
 0x20f   :  { %v633_v10 = vadd.f32 %v878_v58, %v632_v9 }
 0x211   :  { %662 = vst [vmem:[%s1173_s7 + $0x38] sm:$0xff] %v633_v10 }
 0x216   :  { %v635_v33 = vpop.f32.mrf.mxu0 }
 0x217   :  { %v636_v11 = vadd.f32 %v878_v58, %v635_v33 }
 0x219   :  { %663 = vst [vmem:[%s1173_s7 + $0x40] sm:$0xff] %v636_v11 }
 0x21e   :  { %v637_v12 = vpop.f32.mrf.mxu0 }
 0x21f   :  { %v638_v13 = vadd.f32 %v878_v58, %v637_v12 }
 0x221   :  { %664 = vst [vmem:[%s1173_s7 + $0x48] sm:$0xff] %v638_v13 }
 0x226   :  { %v640_v14 = vpop.f32.mrf.mxu0 }
 0x227   :  { %v641_v15 = vadd.f32 %v878_v58, %v640_v14 }
 0x229   :  { %665 = vst [vmem:[%s1173_s7 + $0x50] sm:$0xff] %v641_v15 }
 0x22e   :  { %v642_v16 = vpop.f32.mrf.mxu0 }
 0x22f   :  { %v643_v17 = vadd.f32 %v878_v58, %v642_v16 }
 0x231   :  { %666 = vst [vmem:[%s1173_s7 + $0x58] sm:$0xff] %v643_v17 }
 0x236   :  { %v645_v18 = vpop.f32.mrf.mxu0 }
 0x237   :  { %v646_v19 = vadd.f32 %v878_v58, %v645_v18 }
 0x239   :  { %667 = vst [vmem:[%s1173_s7 + $0x60] sm:$0xff] %v646_v19 }
 0x23e   :  { %v647_v20 = vpop.f32.mrf.mxu0 }
 0x23f   :  { %v648_v21 = vadd.f32 %v878_v58, %v647_v20 }
 0x241   :  { %668 = vst [vmem:[%s1173_s7 + $0x68] sm:$0xff] %v648_v21 }
 0x246   :  { %v650_v22 = vpop.f32.mrf.mxu0 }
 0x247   :  { %v651_v23 = vadd.f32 %v878_v58, %v650_v22 }
 0x249   :  { %669 = vst [vmem:[%s1173_s7 + $0x70] sm:$0xff] %v651_v23 }
 0x24e   :  { %v652_v24 = vpop.f32.mrf.mxu0 }
 0x24f   :  { %v653_v25 = vadd.f32 %v878_v58, %v652_v24 }
 0x251   :  { %670 = vst [vmem:[%s1173_s7 + $0x78] sm:$0xff] %v653_v25 }

</bundles_post_ra>
